<compile_context>
chip_gen: v6e
topology: v6e:2x2x1
jax: 0.10.0
libtpu: 0.0.40
codegen_flags: <defaults>
</compile_context>

<pallas_src>
import functools
import math

import jax
import jax.numpy as jnp
from jax import lax
from jax.experimental import pallas as pl
from jax.experimental.pallas import tpu as pltpu

_TARGET_BLOCK_BYTES = 2 * 1024 * 1024   # per-input VMEM block budget (f32, lane-padded)
_MIN_PALLAS_ELEMENTS = 1 << 16          # below this, plain XLA fusion wins


def _round_up(a: int, b: int) -> int:
    return ((a + b - 1) // b) * b


def _round_down(a: int, b: int) -> int:
    return (a // b) * b


def _default_num_shards() -> int:
    """2 on v7x (2 TensorCores share HBM), 1 on single-TC chips (v5e/v6e)."""
    try:
        kind = jax.devices()[0].device_kind.lower()
    except Exception:  # no accelerator info -> be conservative
        return 1
    # TODO(synk): trace on v7x to confirm the leading "parallel" axis lands on
    # both TensorCores; if not, switch that axis to pltpu.CORE_PARALLEL.
    return 2 if "v7" in kind else 1


def _wbce_kernel(x_ref, t_ref, w_ref, acc_ref, *, block_rows, n_rows, steps,
                 needs_mask):
    """Grid = (shard [parallel], reduction step [arbitrary]).

    acc_ref is the per-shard output block, resident across the reduction axis:
    a (block_rows, C) f32 accumulator of unweighted loss; the class-weight
    multiply is hoisted to the last step.
    """
    s = pl.program_id(0)
    j = pl.program_id(1)

    @pl.when(j == 0)
    def _init():
        acc_ref[...] = jnp.zeros_like(acc_ref)

    x = x_ref[...].astype(jnp.float32)
    t = t_ref[...].astype(jnp.float32)

    if needs_mask:
        # Mask the ragged row tail (and fully-out-of-range duplicate blocks)
        # BEFORE the logs: substituting x=0, t=0 gives exactly-zero loss
        # (log(0) clamps to -100 but t=0 kills that term; log(1-0) = 0), so
        # garbage out-of-bounds data can never poison the accumulator.
        row0 = (s * steps + j) * block_rows
        rows = row0 + lax.broadcasted_iota(jnp.int32, x.shape, 0)
        valid = rows < n_rows
        x = jnp.where(valid, x, 0.0)
        t = jnp.where(valid, t, 0.0)

    # torch BCE clamps the log terms at -100 (also avoids 0 * -inf NaNs).
    log_x = jnp.maximum(jnp.log(x), -100.0)
    log_1mx = jnp.maximum(jnp.log(1.0 - x), -100.0)
    # loss = -(t*log_x + (1-t)*log_1mx), factored; negation folded into the
    # accumulate.  Single store per vreg (v5e has only one vst slot).
    acc_ref[...] -= log_1mx + t * (log_x - log_1mx)

    @pl.when(j == pl.num_programs(1) - 1)
    def _finalize():
        # One weight multiply per accumulator element; (1, C) broadcasts rows.
        acc_ref[...] = acc_ref[...] * w_ref[...]


def weighted_bce_loss(inputs, targets, weights, *, num_shards=None,
                      max_block_rows=None,
                      min_pallas_elements=_MIN_PALLAS_ELEMENTS):
    """Mean over all N*C elements of per-class-weighted binary cross entropy.

    inputs : (N, C) probabilities (f32 or bf16)
    targets: (N, C) labels (f32 / bf16 / int / bool)
    weights: (C,) per-class weights
    """
    N, C = inputs.shape
    total = N * C
    weights = weights.astype(jnp.float32)

    # Tiny inputs: pallas_call fixed cost dominates -> let XLA fuse it.
    if total < min_pallas_elements:
        return _reference(inputs, targets, weights)

    if num_shards is None:
        num_shards = _default_num_shards()

    # Row-block size: target ~2 MiB of VMEM per input block (lanes pad to 128).
    padded_c = _round_up(C, 128)
    cap_rows = max(8, _round_down(_TARGET_BLOCK_BYTES // (4 * padded_c), 8))
    if max_block_rows is not None:
        cap_rows = max(8, min(cap_rows, _round_down(max_block_rows, 8)))

    if N % 8 == 0:
        block_rows = min(cap_rows, N)
    elif N < cap_rows:
        block_rows = N          # single block covering the full (ragged) row dim
    else:
        block_rows = cap_rows   # multiple of 8; ragged tail masked in-kernel

    nblocks = pl.cdiv(N, block_rows)
    num_shards = max(1, min(num_shards, nblocks))
    steps = pl.cdiv(nblocks, num_shards)
    needs_clamp = num_shards * steps > nblocks          # some (s, j) past the end
    needs_mask = needs_clamp or (N % block_rows != 0)   # ragged tail / dup blocks

    if needs_clamp:
        # Duplicate (clamped) blocks are fully masked in-kernel -> contribute 0.
        def in_idx(s, j):
            return (jnp.minimum(s * steps + j, nblocks - 1), 0)
    else:
        def in_idx(s, j):
            return (s * steps + j, 0)

    kernel = functools.partial(_wbce_kernel, block_rows=block_rows, n_rows=N,
                               steps=steps, needs_mask=needs_mask)

    bytes_accessed = (inputs.size * inputs.dtype.itemsize
                      + targets.size * targets.dtype.itemsize
                      + num_shards * block_rows * C * 4
                      + weights.size * 4)

    partial_sums = pl.pallas_call(
        kernel,
        out_shape=jax.ShapeDtypeStruct((num_shards * block_rows, C), jnp.float32),
        grid_spec=pltpu.PrefetchScalarGridSpec(
            num_scalar_prefetch=0,
            grid=(num_shards, steps),
            in_specs=[
                pl.BlockSpec((block_rows, C), in_idx),
                pl.BlockSpec((block_rows, C), in_idx),
                pl.BlockSpec((1, C), lambda s, j: (0, 0)),   # weights, resident
            ],
            out_specs=pl.BlockSpec((block_rows, C), lambda s, j: (s, 0)),
        ),
        compiler_params=pltpu.CompilerParams(
            dimension_semantics=("parallel", "arbitrary"),
        ),
        cost_estimate=pl.CostEstimate(
            flops=8 * total,
            transcendentals=2 * total,
            bytes_accessed=int(bytes_accessed),
        ),
    )(inputs, targets, weights.reshape(1, C))

    # Tiny XLA epilogue: sum the per-shard weighted accumulators.
    return jnp.sum(partial_sums) / jnp.float32(total)


def make_weights(frequencies, scaling_factor=1.0):
    """Deterministic replica of WeightedBCELoss.__init__ weight construction."""
    epsilon = 1e-6
    w = scaling_factor / (frequencies + epsilon)
    w = w * frequencies.shape[0] / jnp.sum(w)
    return w.astype(jnp.float32)


def _reference(inputs, targets, weights):
    x = inputs.astype(jnp.float32)
    t = targets.astype(jnp.float32)
    w = weights.astype(jnp.float32)
    loss = -(t * jnp.maximum(jnp.log(x), -100.0)
             + (1.0 - t) * jnp.maximum(jnp.log(1.0 - x), -100.0))
    return jnp.mean(loss * w[None, :])


if __name__ == "__main__":
    key = jax.random.PRNGKey(0)
    k1, k2, k3 = jax.random.split(key, 3)

    N, C = 16, 32  # small batch, 32 classes

    frequencies = jax.random.uniform(k1, (C,), minval=0.05, maxval=1.0,
                                     dtype=jnp.float32)
    weights = make_weights(frequencies, scaling_factor=1.0)

    inputs = jax.random.uniform(k2, (N, C), minval=1e-4, maxval=1.0 - 1e-4,
                                dtype=jnp.float32)
    targets = (jax.random.uniform(k3, (N, C)) > 0.5).astype(jnp.float32)

    # 1) Basic path (single block, no masking), forced through Pallas.
    out = weighted_bce_loss(inputs, targets, weights, min_pallas_elements=0)
    out = jax.block_until_ready(out)
    ref = _reference(inputs, targets, weights)
    assert jnp.allclose(out, ref, rtol=1e-5, atol=1e-6), (out, ref)

    # 2) Ragged row tail exercising in-kernel masking (no host-side pad copies).
    N2 = 20
    inputs2 = jax.random.uniform(jax.random.PRNGKey(1), (N2, C),
                                 minval=1e-4, maxval=1.0 - 1e-4, dtype=jnp.float32)
    targets2 = (jax.random.uniform(jax.random.PRNGKey(2), (N2, C)) > 0.5
                ).astype(jnp.float32)
    out2 = jax.block_until_ready(
        weighted_bce_loss(inputs2, targets2, weights, min_pallas_elements=0,
                          max_block_rows=8, num_shards=1))
    ref2 = _reference(inputs2, targets2, weights)
    assert jnp.allclose(out2, ref2, rtol=1e-5, atol=1e-6), (out2, ref2)

    # 3) Sharded ("parallel") axis + ragged tail, still tiny shapes.
    N3 = 28
    inputs3 = jax.random.uniform(jax.random.PRNGKey(3), (N3, C),
                                 minval=1e-4, maxval=1.0 - 1e-4, dtype=jnp.float32)
    targets3 = (jax.random.uniform(jax.random.PRNGKey(4), (N3, C)) > 0.5
                ).astype(jnp.float32)
    out3 = jax.block_until_ready(
        weighted_bce_loss(inputs3, targets3, weights, min_pallas_elements=0,
                          max_block_rows=8, num_shards=2))
    ref3 = _reference(inputs3, targets3, weights)
    assert jnp.allclose(out3, ref3, rtol=1e-5, atol=1e-6), (out3, ref3)

    print("KERNEL_OK")
</pallas_src>

<mosaic_0001>
module attributes {stable_mosaic.version = 11 : i64} {
  func.func @_wbce_kernel(%arg0: i32, %arg1: i32, %arg2: memref<16x32xf32, #tpu.memory_space<vmem>>, %arg3: memref<16x32xf32, #tpu.memory_space<vmem>>, %arg4: memref<1x32xf32, #tpu.memory_space<vmem>>, %arg5: memref<16x32xf32, #tpu.memory_space<vmem>>) attributes {dimension_semantics = [#tpu.dimension_semantics<parallel>, #tpu.dimension_semantics<arbitrary>], iteration_bounds = array<i64: 1, 1>, scalar_prefetch = 0 : i64, scratch_operands = 0 : i64, tpu.core_type = #tpu.core_type<tc>, window_params = [{transform_indices = @transform_0, window_bounds = array<i64: 16, 32>}, {transform_indices = @transform_1, window_bounds = array<i64: 16, 32>}, {pipeline_mode = #tpu.pipeline_mode<synchronous>, transform_indices = @transform_2, window_bounds = array<i64: 1, 32>}, {transform_indices = @transform_3, window_bounds = array<i64: 16, 32>}]} {
    %c0_i32 = arith.constant 0 : i32
    %0 = arith.cmpi eq, %arg1, %c0_i32 : i32
    %1 = arith.extui %0 : i1 to i32
    %c0_i32_0 = arith.constant 0 : i32
    %2 = arith.cmpi ne, %1, %c0_i32_0 : i32
    scf.if %2 {
      %cst_12 = arith.constant 0.000000e+00 : f32
      %22 = vector.broadcast %cst_12 : f32 to vector<16x32xf32>
      %c0_13 = arith.constant 0 : index
      %c0_14 = arith.constant 0 : index
      %23 = vector.load %arg5[%c0_13, %c0_14] : memref<16x32xf32, #tpu.memory_space<vmem>>, vector<16x32xf32>
      tpu.vector_store %arg5[%c0_13, %c0_14], %22 {strides = array<i32>} : memref<16x32xf32, #tpu.memory_space<vmem>>, vector<16x32xf32>,
    } else {
    }
    %c0 = arith.constant 0 : index
    %c0_1 = arith.constant 0 : index
    %3 = vector.load %arg2[%c0, %c0_1] : memref<16x32xf32, #tpu.memory_space<vmem>>, vector<16x32xf32>
    %c0_2 = arith.constant 0 : index
    %c0_3 = arith.constant 0 : index
    %4 = vector.load %arg3[%c0_2, %c0_3] : memref<16x32xf32, #tpu.memory_space<vmem>>, vector<16x32xf32>
    %5 = math.log %3 : vector<16x32xf32>
    %cst = arith.constant -1.000000e+02 : f32
    %6 = vector.broadcast %cst : f32 to vector<16x32xf32>
    %7 = arith.maximumf %5, %6 : vector<16x32xf32>
    %cst_4 = arith.constant 1.000000e+00 : f32
    %8 = vector.broadcast %cst_4 : f32 to vector<16x32xf32>
    %9 = arith.subf %8, %3 : vector<16x32xf32>
    %10 = math.log %9 : vector<16x32xf32>
    %cst_5 = arith.constant -1.000000e+02 : f32
    %11 = vector.broadcast %cst_5 : f32 to vector<16x32xf32>
    %12 = arith.maximumf %10, %11 : vector<16x32xf32>
    %c0_6 = arith.constant 0 : index
    %c0_7 = arith.constant 0 : index
    %13 = vector.load %arg5[%c0_6, %c0_7] : memref<16x32xf32, #tpu.memory_space<vmem>>, vector<16x32xf32>
    %14 = arith.subf %7, %12 : vector<16x32xf32>
    %15 = arith.mulf %4, %14 : vector<16x32xf32>
    %16 = arith.addf %12, %15 : vector<16x32xf32>
    %17 = arith.subf %13, %16 : vector<16x32xf32>
    %c0_8 = arith.constant 0 : index
    %c0_9 = arith.constant 0 : index
    %18 = vector.load %arg5[%c0_8, %c0_9] : memref<16x32xf32, #tpu.memory_space<vmem>>, vector<16x32xf32>
    tpu.vector_store %arg5[%c0_8, %c0_9], %17 {strides = array<i32>} : memref<16x32xf32, #tpu.memory_space<vmem>>, vector<16x32xf32>,
    %c0_i32_10 = arith.constant 0 : i32
    %19 = arith.cmpi eq, %arg1, %c0_i32_10 : i32
    %20 = arith.extui %19 : i1 to i32
    %c0_i32_11 = arith.constant 0 : i32
    %21 = arith.cmpi ne, %20, %c0_i32_11 : i32
    scf.if %21 {
      %c0_12 = arith.constant 0 : index
      %c0_13 = arith.constant 0 : index
      %22 = vector.load %arg5[%c0_12, %c0_13] : memref<16x32xf32, #tpu.memory_space<vmem>>, vector<16x32xf32>
      %c0_14 = arith.constant 0 : index
      %c0_15 = arith.constant 0 : index
      %23 = vector.load %arg4[%c0_14, %c0_15] : memref<1x32xf32, #tpu.memory_space<vmem>>, vector<1x32xf32>
      %24 = vector.broadcast %23 : vector<1x32xf32> to vector<16x32xf32>
      %25 = arith.mulf %22, %24 : vector<16x32xf32>
      %c0_16 = arith.constant 0 : index
      %c0_17 = arith.constant 0 : index
      %26 = vector.load %arg5[%c0_16, %c0_17] : memref<16x32xf32, #tpu.memory_space<vmem>>, vector<16x32xf32>
      tpu.vector_store %arg5[%c0_16, %c0_17], %25 {strides = array<i32>} : memref<16x32xf32, #tpu.memory_space<vmem>>, vector<16x32xf32>,
    } else {
    }
    return
  }
  func.func @transform_0(%arg0: i32, %arg1: i32) -> (i32, i32) {
    %c1_i32 = arith.constant 1 : i32
    %0 = arith.muli %arg0, %c1_i32 : i32
    %1 = arith.addi %0, %arg1 : i32
    %c0_i32 = arith.constant 0 : i32
    %c0_i32_0 = arith.constant 0 : i32
    return %1, %c0_i32 : i32, i32
  }
  func.func @transform_1(%arg0: i32, %arg1: i32) -> (i32, i32) {
    %c1_i32 = arith.constant 1 : i32
    %0 = arith.muli %arg0, %c1_i32 : i32
    %1 = arith.addi %0, %arg1 : i32
    %c0_i32 = arith.constant 0 : i32
    %c0_i32_0 = arith.constant 0 : i32
    return %1, %c0_i32 : i32, i32
  }
  func.func @transform_2(%arg0: i32, %arg1: i32) -> (i32, i32) {
    %c0_i32 = arith.constant 0 : i32
    %c0_i32_0 = arith.constant 0 : i32
    %c0_i32_1 = arith.constant 0 : i32
    return %c0_i32, %c0_i32_0 : i32, i32
  }
  func.func @transform_3(%arg0: i32, %arg1: i32) -> (i32, i32) {
    %c0_i32 = arith.constant 0 : i32
    %c0_i32_0 = arith.constant 0 : i32
    return %arg0, %c0_i32 : i32, i32
  }
}

</mosaic_0001>

<bundles_post_ra>
// kernel: tpu_custom_call.1
= control target key start
LH: loop header
LB: loop body
LE: loop exit
PB: predicated region body
PF: predicated region fallthrough
CT: control target
= control target key end

     0   :  { %8 = vsyncpa [#allocation3], 0  ;;  %s261_s0 = inlined_call_operand.hbm [shape: f32[16,32], index: 0, kind: input, shape index: {}]   ;;  %s262_s1 = inlined_call_operand.hbm [shape: f32[16,32], index: 1, kind: input, shape index: {}]   ;;  %s263_s2 = inlined_call_operand.vmem [shape: f32[1,32], index: 2, kind: input, shape index: {}]   ;;  %s264_s3 = inlined_call_operand.hbm [shape: f32[16,32], index: 3, kind: output, shape index: {}]  }
   0x1   :  { %9 = vsyncpa [#allocation6], 0 }
   0x2   :  { %10 = vsyncpa [#allocation4], 0  ;;  %s208_s12 = smov [#allocation2]  }
   0x3   :  { %s20_s13 = sshll.u32 %s208_s12, 4  ;;  %s21_s13 = int_to_ptr.vmem [resolvable:$true] %s20_s13 }
   0x4   :  { %s150_s14 = scalar_lea.vmem %s21_s13, 256  ;;  %p155_p1 = scmp.lt.s32.totalorder %s21_s13, %s21_s13 }
   0x5   :  { %p151_p0 = scmp.ne.s32.totalorder %s21_s13, %s150_s14  ;;  %p156_p2 = scmp.lt.s32.totalorder %s150_s14, %s150_s14 }
   0x7   :  { %p157_p3 = por %p156_p2, %p155_p1 }
   0x9   :  { %p158_p4 = pnand %p157_p3, %p151_p0 }
   0xb   :  { %161 = shalt.err (!%p158_p4)
}
   0xc   :  { %s209_s15 = smov 128   ;;  %s210_s16 = smov 8  }
   0xd   :  { %26 = dma.hbm_to_vmem [thread:$0]  %s261_s0, 256, %s21_s13, [#allocation3], %s209_s15, %s209_s15, %s210_s16  }
   0xe   :  { %s211_s19 = smov [#allocation5]  }
   0xf   :  { %s36_s20 = sshll.u32 %s211_s19, 4  ;;  %s37_s20 = int_to_ptr.vmem [resolvable:$true] %s36_s20 }
  0x10   :  { %s170_s21 = scalar_lea.vmem %s37_s20, 256  ;;  %p175_p6 = scmp.lt.s32.totalorder %s37_s20, %s37_s20 }
  0x11   :  { %p171_p5 = scmp.ne.s32.totalorder %s37_s20, %s170_s21  ;;  %p176_p7 = scmp.lt.s32.totalorder %s170_s21, %s170_s21 }
  0x13   :  { %p177_p8 = por %p176_p7, %p175_p6 }
  0x15   :  { %p178_p9 = pnand %p177_p8, %p171_p5 }
  0x17   :  { %181 = shalt.err (!%p178_p9)
}
  0x18   :  { %42 = dma.hbm_to_vmem [thread:$0]  %s262_s1, 256, %s37_s20, [#allocation6], %s209_s15, %s209_s15, %s210_s16  }
  0x19   :  { %202 = dma.done.wait [#allocation3], 256  }
  0x1a   :  { %203 = vsyncadd [#allocation3], 4294967040 }
  0x1b   :  { %204 = dma.done.wait [#allocation6], 256  }
  0x1c   :  { %205 = vsyncadd [#allocation6], 4294967040  ;;  %vm59_vm0 = vcmask 261120   ;;  %v212_v0 = vmov 0.0   ;;  %v62_v1 = vld [vmem:[#allocation2] sm:$0xff]  ;;  %v63_v2 = vld [vmem:[#allocation2 + $0x8] sm:$0xff] }
  0x1d   :  { %60 = vst.msk [vmem:[#allocation7] sm:$0xff] %vm59_vm0, %v212_v0  ;;  %61 = vst.msk [vmem:[#allocation7 + $0x8] sm:$0xff] %vm59_vm0, %v212_v0  ;;  %134 = vlog2.f32 %v62_v1  ;;  %v72_v3 = vsub.f32 1.0, %v62_v1  ;;  %v73_v4 = vsub.f32 1.0, %v63_v2  ;;  %v64_v16 = vld [vmem:[#allocation5] sm:$0xff]  ;;  %v65_v19 = vld [vmem:[#allocation5 + $0x8] sm:$0xff] }
  0x1e   :  { %136 = vlog2.f32 %v63_v2  ;;  %v127_v29 = vld [vmem:[%s263_s2] ss:$0 sm:$0xff]  ;;  %s213_s24 = smov [#allocation7]  }
  0x1f   :  { %138 = vlog2.f32 %v72_v3  ;;  %s114_s25 = sshll.u32 %s213_s24, 4  ;;  %s115_s25 = int_to_ptr.vmem [resolvable:$true] %s114_s25 }
  0x20   :  { %140 = vlog2.f32 %v73_v4  ;;  %s182_s26 = scalar_lea.vmem %s115_s25, 256  ;;  %p187_p11 = scmp.lt.s32.totalorder %s115_s25, %s115_s25 }
  0x21   :  { %p183_p10 = scmp.ne.s32.totalorder %s115_s25, %s182_s26  ;;  %p188_p12 = scmp.lt.s32.totalorder %s182_s26, %s182_s26 }
  0x23   :  { %p189_p13 = por %p188_p12, %p187_p11 }
  0x24   :  { %v80_v22 = vld [vmem:[#allocation7] sm:$0xff]  ;;  %v81_v25 = vld [vmem:[#allocation7 + $0x8] sm:$0xff] }
  0x25   :  { %p190_p0 = pnand %p189_p13, %p183_p10 }
  0x2a   :  { %v135_v5 = vpop.eup %134 }
  0x2b   :  { %v137_v6 = vpop.eup %136  ;;  %v67_v7 = vmul.f32 0.6931472, %v135_v5 }
  0x2c   :  { %v139_v8 = vpop.eup %138  ;;  %v69_v9 = vmul.f32 0.6931472, %v137_v6 }
  0x2d   :  { %v141_v10 = vpop.eup %140  ;;  %v70_v11 = vmax.f32 %v67_v7, -100.0  ;;  %v75_v12 = vmul.f32 0.6931472, %v139_v8 }
  0x2e   :  { %v71_v13 = vmax.f32 %v69_v9, -100.0  ;;  %v77_v14 = vmul.f32 0.6931472, %v141_v10 }
  0x2f   :  { %v78_v15 = vmax.f32 %v75_v12, -100.0 }
  0x30   :  { %v79_v17 = vmax.f32 %v77_v14, -100.0 }
  0x31   :  { %v82_v18 = vsub.f32 %v70_v11, %v78_v15 }
  0x32   :  { %v83_v20 = vsub.f32 %v71_v13, %v79_v17 }
  0x33   :  { %v84_v21 = vmul.f32 %v82_v18, %v64_v16 }
  0x34   :  { %v85_v23 = vmul.f32 %v83_v20, %v65_v19 }
  0x35   :  { %v86_v24 = vadd.f32 %v84_v21, %v78_v15 }
  0x36   :  { %v87_v26 = vadd.f32 %v85_v23, %v79_v17 }
  0x37   :  { %v88_v27 = vsub.f32 %v80_v22, %v86_v24 }
  0x38   :  { %v89_v28 = vsub.f32 %v81_v25, %v87_v26 }
  0x39   :  { %91 = vst.msk [vmem:[#allocation7] sm:$0xff] %vm59_vm0, %v88_v27 }
  0x3a   :  { %92 = vst.msk [vmem:[#allocation7 + $0x8] sm:$0xff] %vm59_vm0, %v89_v28 }
  0x40   :  { %v96_v30 = vld [vmem:[#allocation7] sm:$0xff] }
  0x41   :  { %v105_v31 = vmul.f32 %v127_v29, %v96_v30  ;;  %v97_v32 = vld [vmem:[#allocation7 + $0x8] sm:$0xff] }
  0x42   :  { %v106_v33 = vmul.f32 %v127_v29, %v97_v32 }
  0x43   :  { %107 = vst.msk [vmem:[#allocation7] sm:$0xff] %vm59_vm0, %v105_v31 }
  0x44   :  { %108 = vst.msk [vmem:[#allocation7 + $0x8] sm:$0xff] %vm59_vm0, %v106_v33 }
  0x45   :  { %193 = shalt.err (!%p190_p0)
}
  0x46   :  { %120 = dma.vmem_to_hbm [thread:$0]  %s115_s25, 256, %s264_s3, [#allocation4], %s209_s15, %s209_s15, %s210_s16  }
  0x47   :  { %206 = dma.done.wait [#allocation4], 256  }
  0x48   :  { %207 = vsyncadd [#allocation4], 4294967040 }
  0x49   :  { %124 = vsyncpa [#allocation3], 1 }
  0x4a   :  { %125 = vsyncpa [#allocation6], 1 }
  0x4b   :  { %126 = vsyncpa [#allocation4], 1 }

</bundles_post_ra>
